<compile_context>
chip_gen: v7x
topology: tpu7x:2x2x1
jax: 0.10.0
libtpu: 0.0.40
codegen_flags: <defaults>
</compile_context>

<pallas_src>
import numpy as np
import jax
import jax.numpy as jnp
from jax import lax
from jax.experimental import pallas as pl
from jax.experimental.pallas import tpu as pltpu


def _round_up(x, m):
    return ((x + m - 1) // m) * m


def accuracy_score_pallas(predict_labels, true_labels, *, tb=512):
    """Pallas TPU implementation of the Accuracy_score module's forward pass.

    predict_labels, true_labels: (B, L) binary {0, 1} matrices (any numeric dtype).
    Returns (macro_Acc, micro_Acc, mean_sample_Acc) as float32 scalars.
    """
    B, L = predict_labels.shape
    assert true_labels.shape == (B, L)

    # Batch tile: multiple of 8, clamped to the (rounded-up) batch, default 512 rows.
    tb = max(8, (int(tb) // 8) * 8)
    tb = min(tb, _round_up(B, 8))
    n_blocks = pl.cdiv(B, tb)

    # No-op when inputs are already float32; keeps in-kernel math simple & exact.
    p32 = predict_labels.astype(jnp.float32)
    t32 = true_labels.astype(jnp.float32)

    def acc_kernel(pred_ref, true_ref, tp_cls_ref, tn_cls_ref, samp_ref):
        b = pl.program_id(0)

        p = pred_ref[...]                       # (tb, L) f32 in {0, 1}
        t = true_ref[...]                       # (tb, L)

        p1 = p == 1.0
        t1 = t == 1.0
        p0 = p == 0.0
        t0 = t == 0.0

        # Mask out rows past the real batch (ragged last block reads undefined data,
        # but comparisons always yield 0/1 and the mask zeroes those rows out).
        row = b * tb + lax.broadcasted_iota(jnp.int32, (tb, 1), 0)   # (tb, 1)
        valid = (row < B).astype(jnp.float32)                        # (tb, 1)

        tp = jnp.logical_and(p1, t1).astype(jnp.float32) * valid     # (tb, L)
        tn = jnp.logical_and(p0, t0).astype(jnp.float32) * valid     # (tb, L)
        un = jnp.logical_or(p1, t1).astype(jnp.float32) * valid      # (tb, L)

        # ---- per-sample Jaccard accuracy, summed over this batch tile ----
        tp_s = jnp.sum(tp, axis=1, keepdims=True)                    # (tb, 1)
        un_s = jnp.sum(un, axis=1, keepdims=True)                    # (tb, 1)
        # TODO(synk): the module's runtime asserts (np.isfinite on sample_Acc, per-class
        # count sanity check) have no in-kernel equivalent; safe division is used here.
        samp = jnp.where(un_s > 0.0, tp_s / jnp.maximum(un_s, 1.0), 0.0)
        samp_ref[...] = jnp.sum(samp, axis=0, keepdims=True).reshape(1, 1, 1)

        # ---- per-class partial sums over this batch tile ----
        tp_cls_ref[...] = jnp.sum(tp, axis=0, keepdims=True).reshape(1, 1, L)
        tn_cls_ref[...] = jnp.sum(tn, axis=0, keepdims=True).reshape(1, 1, L)

    tp_part, tn_part, samp_part = pl.pallas_call(
        acc_kernel,
        out_shape=(
            jax.ShapeDtypeStruct((n_blocks, 1, L), jnp.float32),
            jax.ShapeDtypeStruct((n_blocks, 1, L), jnp.float32),
            jax.ShapeDtypeStruct((n_blocks, 1, 1), jnp.float32),
        ),
        grid_spec=pltpu.PrefetchScalarGridSpec(
            num_scalar_prefetch=0,
            grid=(n_blocks,),
            in_specs=[
                pl.BlockSpec((tb, L), lambda b: (b, 0)),
                pl.BlockSpec((tb, L), lambda b: (b, 0)),
            ],
            out_specs=[
                pl.BlockSpec((1, 1, L), lambda b: (b, 0, 0)),
                pl.BlockSpec((1, 1, L), lambda b: (b, 0, 0)),
                pl.BlockSpec((1, 1, 1), lambda b: (b, 0, 0)),
            ],
        ),
        compiler_params=pltpu.CompilerParams(
            dimension_semantics=("parallel",)),   # independent per-block partials
    )(p32, t32)

    # Tiny final reductions (n_blocks values) in plain JAX, mirroring the module math.
    tp_cls = jnp.sum(tp_part[:, 0, :], axis=0)    # (L,)
    tn_cls = jnp.sum(tn_part[:, 0, :], axis=0)    # (L,)
    Bf = jnp.float32(B)
    # For binary labels: TP_c + FP_c + TN_c + FN_c == B for every class (the module
    # asserts exactly this), so the denominators reduce to B.
    macro_acc = jnp.mean((tp_cls + tn_cls) / Bf)
    micro_acc = (jnp.mean(tp_cls) + jnp.mean(tn_cls)) / Bf
    sample_acc_mean = jnp.sum(samp_part) / Bf
    return macro_acc, micro_acc, sample_acc_mean


def _accuracy_reference(pred, true):
    """Pure-numpy reference replicating the PyTorch module exactly."""
    pred = np.asarray(pred)
    true = np.asarray(true)
    TP = np.logical_and(pred == 1, true == 1).astype(int)
    union = np.logical_or(pred == 1, true == 1).astype(int)
    TP_sample = TP.sum(axis=1)
    union_sample = union.sum(axis=1)
    sample_Acc = TP_sample / union_sample
    assert np.isfinite(sample_Acc).all(), "Nan found in sample accuracy"
    FP = np.logical_and(pred == 1, true == 0).astype(int)
    TN = np.logical_and(pred == 0, true == 0).astype(int)
    FN = np.logical_and(pred == 0, true == 1).astype(int)
    TP_cls = TP.sum(axis=0)
    FP_cls = FP.sum(axis=0)
    TN_cls = TN.sum(axis=0)
    FN_cls = FN.sum(axis=0)
    assert (TP_cls + FP_cls + TN_cls + FN_cls == pred.shape[0]).all(), "wrong"
    macro_Acc = np.mean((TP_cls + TN_cls) / (TP_cls + FP_cls + TN_cls + FN_cls))
    micro_Acc = (TP_cls.mean() + TN_cls.mean()) / (
        TP_cls.mean() + FP_cls.mean() + TN_cls.mean() + FN_cls.mean())
    return float(macro_Acc), float(micro_Acc), float(sample_Acc.mean())


if __name__ == "__main__":
    key = jax.random.PRNGKey(0)
    kp, kt = jax.random.split(key)
    B, L = 16, 20
    predict_labels = jax.random.bernoulli(kp, 0.5, (B, L)).astype(jnp.float32)
    true_labels = jax.random.bernoulli(kt, 0.4, (B, L)).astype(jnp.float32)
    # The module asserts every sample has a non-empty union; guarantee it.
    predict_labels = predict_labels.at[:, 0].set(1.0)

    macro, micro, smean = accuracy_score_pallas(predict_labels, true_labels)
    (macro, micro, smean) = jax.block_until_ready((macro, micro, smean))

    ref_macro, ref_micro, ref_smean = _accuracy_reference(
        np.asarray(predict_labels), np.asarray(true_labels))

    assert abs(float(macro) - ref_macro) < 1e-5, (float(macro), ref_macro)
    assert abs(float(micro) - ref_micro) < 1e-5, (float(micro), ref_micro)
    assert abs(float(smean) - ref_smean) < 1e-5, (float(smean), ref_smean)
    print("KERNEL_OK")
</pallas_src>

<mosaic_0001>
module attributes {stable_mosaic.version = 11 : i64} {
  func.func @acc_kernel(%arg0: i32, %arg1: memref<16x20xf32, #tpu.memory_space<vmem>>, %arg2: memref<16x20xf32, #tpu.memory_space<vmem>>, %arg3: memref<1x1x20xf32, #tpu.memory_space<vmem>>, %arg4: memref<1x1x20xf32, #tpu.memory_space<vmem>>, %arg5: memref<1x1x1xf32, #tpu.memory_space<vmem>>) attributes {dimension_semantics = [#tpu.dimension_semantics<parallel>], iteration_bounds = array<i64: 1>, scalar_prefetch = 0 : i64, scratch_operands = 0 : i64, tpu.core_type = #tpu.core_type<tc>, window_params = [{transform_indices = @transform_0, window_bounds = array<i64: 16, 20>}, {transform_indices = @transform_1, window_bounds = array<i64: 16, 20>}, {transform_indices = @transform_2, window_bounds = array<i64: 1, 1, 20>}, {transform_indices = @transform_3, window_bounds = array<i64: 1, 1, 20>}, {transform_indices = @transform_4, window_bounds = array<i64: 1, 1, 1>}]} {
    %c0 = arith.constant 0 : index
    %c0_0 = arith.constant 0 : index
    %0 = vector.load %arg1[%c0, %c0_0] : memref<16x20xf32, #tpu.memory_space<vmem>>, vector<16x20xf32>
    %c0_1 = arith.constant 0 : index
    %c0_2 = arith.constant 0 : index
    %1 = vector.load %arg2[%c0_1, %c0_2] : memref<16x20xf32, #tpu.memory_space<vmem>>, vector<16x20xf32>
    %cst = arith.constant 1.000000e+00 : f32
    %2 = vector.broadcast %cst : f32 to vector<16x20xf32>
    %3 = arith.cmpf oeq, %0, %2 : vector<16x20xf32>
    %cst_3 = arith.constant 1.000000e+00 : f32
    %4 = vector.broadcast %cst_3 : f32 to vector<16x20xf32>
    %5 = arith.cmpf oeq, %1, %4 : vector<16x20xf32>
    %cst_4 = arith.constant 0.000000e+00 : f32
    %6 = vector.broadcast %cst_4 : f32 to vector<16x20xf32>
    %7 = arith.cmpf oeq, %0, %6 : vector<16x20xf32>
    %cst_5 = arith.constant 0.000000e+00 : f32
    %8 = vector.broadcast %cst_5 : f32 to vector<16x20xf32>
    %9 = arith.cmpf oeq, %1, %8 : vector<16x20xf32>
    %c16_i32 = arith.constant 16 : i32
    %10 = arith.muli %arg0, %c16_i32 : i32
    %11 = tpu.iota {dimensions = array<i32: 0>} : vector<16x1xi32>
    %12 = vector.broadcast %10 : i32 to vector<16x1xi32>
    %13 = arith.addi %12, %11 : vector<16x1xi32>
    %c16_i32_6 = arith.constant 16 : i32
    %14 = vector.broadcast %c16_i32_6 : i32 to vector<16x1xi32>
    %15 = arith.cmpi slt, %13, %14 : vector<16x1xi32>
    %16 = arith.extui %15 : vector<16x1xi1> to vector<16x1xi32>
    %17 = arith.sitofp %16 : vector<16x1xi32> to vector<16x1xf32>
    %18 = arith.andi %3, %5 : vector<16x20xi1>
    %19 = arith.extui %18 : vector<16x20xi1> to vector<16x20xi32>
    %20 = arith.sitofp %19 : vector<16x20xi32> to vector<16x20xf32>
    %21 = vector.broadcast %17 : vector<16x1xf32> to vector<16x20xf32>
    %22 = arith.mulf %20, %21 : vector<16x20xf32>
    %23 = arith.andi %7, %9 : vector<16x20xi1>
    %24 = arith.extui %23 : vector<16x20xi1> to vector<16x20xi32>
    %25 = arith.sitofp %24 : vector<16x20xi32> to vector<16x20xf32>
    %26 = vector.broadcast %17 : vector<16x1xf32> to vector<16x20xf32>
    %27 = arith.mulf %25, %26 : vector<16x20xf32>
    %28 = arith.ori %3, %5 : vector<16x20xi1>
    %29 = arith.extui %28 : vector<16x20xi1> to vector<16x20xi32>
    %30 = arith.sitofp %29 : vector<16x20xi32> to vector<16x20xf32>
    %31 = vector.broadcast %17 : vector<16x1xf32> to vector<16x20xf32>
    %32 = arith.mulf %30, %31 : vector<16x20xf32>
    %cst_7 = arith.constant dense<0.000000e+00> : vector<16xf32>
    %33 = vector.multi_reduction <add>, %22, %cst_7 [1] : vector<16x20xf32> to vector<16xf32>
    %34 = vector.shape_cast %33 : vector<16xf32> to vector<16x1xf32>
    %cst_8 = arith.constant dense<0.000000e+00> : vector<16xf32>
    %35 = vector.multi_reduction <add>, %32, %cst_8 [1] : vector<16x20xf32> to vector<16xf32>
    %36 = vector.shape_cast %35 : vector<16xf32> to vector<16x1xf32>
    %cst_9 = arith.constant 0.000000e+00 : f32
    %37 = vector.broadcast %cst_9 : f32 to vector<16x1xf32>
    %38 = arith.cmpf ogt, %36, %37 : vector<16x1xf32>
    %cst_10 = arith.constant 1.000000e+00 : f32
    %39 = vector.broadcast %cst_10 : f32 to vector<16x1xf32>
    %40 = arith.maximumf %36, %39 : vector<16x1xf32>
    %41 = arith.divf %34, %40 : vector<16x1xf32>
    %cst_11 = arith.constant 0.000000e+00 : f32
    %42 = vector.broadcast %cst_11 : f32 to vector<16x1xf32>
    %43 = arith.select %38, %41, %42 : vector<16x1xi1>, vector<16x1xf32>
    %cst_12 = arith.constant dense<0.000000e+00> : vector<1xf32>
    %44 = vector.multi_reduction <add>, %43, %cst_12 [0] : vector<16x1xf32> to vector<1xf32>
    %45 = vector.shape_cast %44 : vector<1xf32> to vector<1x1xf32>
    %46 = vector.shape_cast %45 : vector<1x1xf32> to vector<1x1x1xf32>
    %c0_13 = arith.constant 0 : index
    %c0_14 = arith.constant 0 : index
    %c0_15 = arith.constant 0 : index
    %47 = vector.load %arg5[%c0_13, %c0_14, %c0_15] : memref<1x1x1xf32, #tpu.memory_space<vmem>>, vector<1x1x1xf32>
    tpu.vector_store %arg5[%c0_13, %c0_14, %c0_15], %46 {strides = array<i32>} : memref<1x1x1xf32, #tpu.memory_space<vmem>>, vector<1x1x1xf32>,
    %cst_16 = arith.constant dense<0.000000e+00> : vector<20xf32>
    %48 = vector.multi_reduction <add>, %22, %cst_16 [0] : vector<16x20xf32> to vector<20xf32>
    %49 = vector.shape_cast %48 : vector<20xf32> to vector<1x20xf32>
    %50 = vector.shape_cast %49 : vector<1x20xf32> to vector<1x1x20xf32>
    %c0_17 = arith.constant 0 : index
    %c0_18 = arith.constant 0 : index
    %c0_19 = arith.constant 0 : index
    %51 = vector.load %arg3[%c0_17, %c0_18, %c0_19] : memref<1x1x20xf32, #tpu.memory_space<vmem>>, vector<1x1x20xf32>
    tpu.vector_store %arg3[%c0_17, %c0_18, %c0_19], %50 {strides = array<i32>} : memref<1x1x20xf32, #tpu.memory_space<vmem>>, vector<1x1x20xf32>,
    %cst_20 = arith.constant dense<0.000000e+00> : vector<20xf32>
    %52 = vector.multi_reduction <add>, %27, %cst_20 [0] : vector<16x20xf32> to vector<20xf32>
    %53 = vector.shape_cast %52 : vector<20xf32> to vector<1x20xf32>
    %54 = vector.shape_cast %53 : vector<1x20xf32> to vector<1x1x20xf32>
    %c0_21 = arith.constant 0 : index
    %c0_22 = arith.constant 0 : index
    %c0_23 = arith.constant 0 : index
    %55 = vector.load %arg4[%c0_21, %c0_22, %c0_23] : memref<1x1x20xf32, #tpu.memory_space<vmem>>, vector<1x1x20xf32>
    tpu.vector_store %arg4[%c0_21, %c0_22, %c0_23], %54 {strides = array<i32>} : memref<1x1x20xf32, #tpu.memory_space<vmem>>, vector<1x1x20xf32>,
    return
  }
  func.func @transform_0(%arg0: i32) -> (i32, i32) {
    %c0_i32 = arith.constant 0 : i32
    %c0_i32_0 = arith.constant 0 : i32
    return %arg0, %c0_i32 : i32, i32
  }
  func.func @transform_1(%arg0: i32) -> (i32, i32) {
    %c0_i32 = arith.constant 0 : i32
    %c0_i32_0 = arith.constant 0 : i32
    return %arg0, %c0_i32 : i32, i32
  }
  func.func @transform_2(%arg0: i32) -> (i32, i32, i32) {
    %c0_i32 = arith.constant 0 : i32
    %c0_i32_0 = arith.constant 0 : i32
    %c0_i32_1 = arith.constant 0 : i32
    return %arg0, %c0_i32, %c0_i32_0 : i32, i32, i32
  }
  func.func @transform_3(%arg0: i32) -> (i32, i32, i32) {
    %c0_i32 = arith.constant 0 : i32
    %c0_i32_0 = arith.constant 0 : i32
    %c0_i32_1 = arith.constant 0 : i32
    return %arg0, %c0_i32, %c0_i32_0 : i32, i32, i32
  }
  func.func @transform_4(%arg0: i32) -> (i32, i32, i32) {
    %c0_i32 = arith.constant 0 : i32
    %c0_i32_0 = arith.constant 0 : i32
    %c0_i32_1 = arith.constant 0 : i32
    return %arg0, %c0_i32, %c0_i32_0 : i32, i32, i32
  }
}

</mosaic_0001>

<bundles_post_ra>
// kernel: tpu_custom_call.1
= control target key start
LH: loop header
LB: loop body
LE: loop exit
PB: predicated region body
PF: predicated region fallthrough
CT: control target
= control target key end

     0   :  { %10 = vsyncpa [#allocation3], 0  ;;  %s430_s0 = inlined_call_operand.hbm [shape: f32[16,20], index: 0, kind: input, shape index: {}]   ;;  %s431_s1 = inlined_call_operand.hbm [shape: f32[16,20], index: 1, kind: input, shape index: {}]   ;;  %s432_s2 = inlined_call_operand.hbm [shape: f32[1,1,20], index: 2, kind: output, shape index: {0}]   ;;  %s433_s3 = inlined_call_operand.hbm [shape: f32[1,1,20], index: 3, kind: output, shape index: {1}]   ;;  %s434_s4 = inlined_call_operand.hbm [shape: f32[1,1,1], index: 4, kind: output, shape index: {2}]  }
   0x1   :  { %11 = vsyncpa [#allocation6], 0 }
   0x2   :  { %12 = vsyncpa [#allocation4], 0 }
   0x3   :  { %13 = vsyncpa [#allocation9], 0  ;;  %s323_s15 = smov [#allocation2]   ;;  %s205_s19 = scalar_lea.hbm %s430_s0, 256 }
   0x4   :  { %s19_s16 = sshll.u32 %s323_s15, 4  ;;  %p206_p0 = scmp.ne.s32.totalorder %s430_s0, %s205_s19  ;;  %s20_s16 = int_to_ptr.vmem [resolvable:$true] %s19_s16 }
   0x5   :  { %p209_p1 = scmp.lt.u32.totalorder %s205_s19, %s430_s0 }
   0x7   :  { %p211_p2 = pnand %p209_p1, %p206_p0 }
   0x9   :  { %214 = shalt.err (!%p211_p2)
}
   0xa   :  { %s215_s24 = scalar_lea.vmem %s20_s16, 256  ;;  %p220_p4 = scmp.lt.s32.totalorder %s20_s16, %s20_s16 }
   0xb   :  { %p216_p3 = scmp.ne.s32.totalorder %s20_s16, %s215_s24  ;;  %p221_p5 = scmp.lt.s32.totalorder %s215_s24, %s215_s24 }
   0xd   :  { %p222_p6 = por %p221_p5, %p220_p4 }
   0xf   :  { %p223_p7 = pnand %p222_p6, %p216_p3 }
  0x11   :  { %226 = shalt.err (!%p223_p7)
}
  0x12   :  { %s324_s25 = smov 128   ;;  %s325_s26 = smov 8  }
  0x13   :  { %25 = dma.hbm_to_vmem [thread:$0]  %s430_s0, 256, %s20_s16, [#allocation3], %s324_s25, %s324_s25, %s325_s26  }
  0x14   :  { %s326_s29 = smov [#allocation5]   ;;  %s227_s7 = scalar_lea.hbm %s431_s1, 256 }
  0x15   :  { %s31_s30 = sshll.u32 %s326_s29, 4  ;;  %p228_p8 = scmp.ne.s32.totalorder %s431_s1, %s227_s7  ;;  %s32_s30 = int_to_ptr.vmem [resolvable:$true] %s31_s30 }
  0x16   :  { %p231_p9 = scmp.lt.u32.totalorder %s227_s7, %s431_s1 }
  0x18   :  { %p233_p10 = pnand %p231_p9, %p228_p8 }
  0x1a   :  { %236 = shalt.err (!%p233_p10)
}
  0x1b   :  { %s237_s12 = scalar_lea.vmem %s32_s30, 256  ;;  %p242_p12 = scmp.lt.s32.totalorder %s32_s30, %s32_s30 }
  0x1c   :  { %p238_p11 = scmp.ne.s32.totalorder %s32_s30, %s237_s12  ;;  %p243_p13 = scmp.lt.s32.totalorder %s237_s12, %s237_s12 }
  0x1e   :  { %p244_p0 = por %p243_p13, %p242_p12 }
  0x20   :  { %p245_p1 = pnand %p244_p0, %p238_p11 }
  0x22   :  { %248 = shalt.err (!%p245_p1)
}
  0x23   :  { %37 = dma.hbm_to_vmem [thread:$0]  %s431_s1, 256, %s32_s30, [#allocation6], %s324_s25, %s324_s25, %s325_s26  }
  0x24   :  { %315 = dma.done.wait [#allocation3], 256  }
  0x25   :  { %316 = vsyncadd [#allocation3], 4294967040 }
  0x26   :  { %317 = dma.done.wait [#allocation6], 256  }
  0x27   :  { %318 = vsyncadd [#allocation6], 4294967040  ;;  %v44_v0 = vld [vmem:[#allocation2] sm:$0xff]  ;;  %v46_v1 = vld [vmem:[#allocation5] sm:$0xff]  ;;  %vm93_vm2 = vcmask 162816   ;;  %v327_v4 = vmov 0.0  }
  0x28   :  { %v45_v2 = vld [vmem:[#allocation2 + $0x8] sm:$0xff]  ;;  %vm48_vm0 = vcmp.eq.f32.partialorder %v44_v0, 1.0  ;;  %vm50_vm1 = vcmp.eq.f32.partialorder %v46_v1, 1.0  ;;  %v47_v3 = vld [vmem:[#allocation5 + $0x8] sm:$0xff]  ;;  %vm52_vm9 = vcmp.eq.f32.partialorder %v44_v0, 0.0  ;;  %vm54_vm10 = vcmp.eq.f32.partialorder %v46_v1, 0.0 }
  0x29   :  { %vm49_vm3 = vcmp.eq.f32.partialorder %v45_v2, 1.0  ;;  %vm51_vm4 = vcmp.eq.f32.partialorder %v47_v3, 1.0  ;;  %vm85_vm5 = vmor %vm48_vm0, %vm50_vm1  ;;  %vm53_vm11 = vcmp.eq.f32.partialorder %v45_v2, 0.0  ;;  %vm55_vm12 = vcmp.eq.f32.partialorder %v47_v3, 0.0  ;;  %s328_s1 = smov [#allocation8]   ;;  %s329_s15 = smov [#allocation7]  }
  0x2a   :  { %v191_v5 = vsel %vm85_vm5, 1.0, %v327_v4  ;;  %vm86_vm6 = vmor %vm49_vm3, %vm51_vm4  ;;  %vm132_vm15 = vcmask 155648   ;;  %s160_s14 = sshll.u32 %s328_s1, 4  ;;  %s150_s16 = sshll.u32 %s329_s15, 4  ;;  %s386_s14 = int_to_ptr.vmem [resolvable:$true] %s160_s14  ;;  %s151_s16 = int_to_ptr.vmem [resolvable:$true] %s150_s16 }
  0x2b   :  { %v100_v6 = vsel %vm93_vm2, %v191_v5, 0.0  ;;  %v192_v7 = vsel %vm86_vm6, 1.0, %v327_v4  ;;  %vm69_vm7 = vmand %vm48_vm0, %vm50_vm1  ;;  %s249_s17 = scalar_lea.vmem %s151_s16, 16  ;;  %s253_s18 = scalar_lea.vmem %s151_s16, 32 }
  0x2c   :  { %101 = vadd.xlane.f32.xlu0 %v100_v6  ;;  %v103_v8 = vsel %vm93_vm2, %v192_v7, 0.0  ;;  %v187_v9 = vsel %vm69_vm7, 1.0, %v327_v4  ;;  %vm70_vm8 = vmand %vm49_vm3, %vm51_vm4  ;;  %p250_p2 = scmp.ne.s32.totalorder %s151_s16, %s249_s17  ;;  %p254_p3 = scmp.lt.s32.totalorder %s151_s16, %s151_s16 }
  0x2d   :  { %v94_v10 = vsel %vm93_vm2, %v187_v9, 0.0  ;;  %v188_v11 = vsel %vm70_vm8, 1.0, %v327_v4  ;;  %vm77_vm13 = vmand %vm52_vm9, %vm54_vm10  ;;  %p255_p4 = scmp.lt.s32.totalorder %s253_s18, %s249_s17 }
  0x2e   :  { %95 = vadd.xlane.f32.xlu1 %v94_v10  ;;  %v97_v12 = vsel %vm93_vm2, %v188_v11, 0.0  ;;  %vm78_vm14 = vmand %vm53_vm11, %vm55_vm12  ;;  %v189_v14 = vsel %vm77_vm13, 1.0, %v327_v4 }
  0x2f   :  { %v125_v13 = vadd.f32 %v97_v12, %v94_v10  ;;  %v190_v15 = vsel %vm78_vm14, 1.0, %v327_v4  ;;  %v134_v17 = vsel %vm93_vm2, %v189_v14, 0.0  ;;  %p256_p5 = por %p255_p4, %p254_p3 }
  0x30   :  { %104 = vadd.xlane.f32.xlu0 %v103_v8  ;;  %v135_v18 = vsel %vm93_vm2, %v190_v15, 0.0 }
  0x31   :  { %v126_v16 = vrot.slane %v125_v13, 4  ;;  %v136_v20 = vadd.f32 %v135_v18, %v134_v17  ;;  %p257_p6 = pnand %p256_p5, %p250_p2 }
  0x32   :  { %98 = vadd.xlane.f32.xlu1 %v97_v12 }
  0x33   :  { %v127_v19 = vadd.f32 %v126_v16, %v125_v13  ;;  %v137_v22 = vrot.slane %v136_v20, 4 }
  0x35   :  { %v128_v21 = vrot.slane %v127_v19, 2  ;;  %v138_v24 = vadd.f32 %v137_v22, %v136_v20 }
  0x37   :  { %v129_v23 = vadd.f32 %v128_v21, %v127_v19  ;;  %v139_v25 = vrot.slane %v138_v24, 2 }
  0x39   :  { %v130_v26 = vrot.slane %v129_v23, 1  ;;  %v140_v27 = vadd.f32 %v139_v25, %v138_v24 }
  0x3b   :  { %v141_v28 = vrot.slane %v140_v27, 1  ;;  %v131_v29 = vadd.f32 %v130_v26, %v129_v23 }
  0x3d   :  { %v142_v30 = vadd.f32 %v141_v28, %v140_v27  ;;  %133 = vst.msk [vmem:[#allocation7] sm:$0x1] %vm132_vm15, %v131_v29 }
  0x3f   :  { %143 = vst.msk [vmem:[#allocation8] sm:$0x1] %vm132_vm15, %v142_v30 }
  0x40   :  { %260 = shalt.err (!%p257_p6)
}
  0x41   :  { %s261_s21 = scalar_lea.hbm %s432_s2, 16 }
  0x42   :  { %p262_p7 = scmp.ne.s32.totalorder %s432_s2, %s261_s21  ;;  %p265_p8 = scmp.lt.u32.totalorder %s261_s21, %s432_s2 }
  0x44   :  { %p267_p9 = pnand %p265_p8, %p262_p7 }
  0x46   :  { %270 = shalt.err (!%p267_p9)
}
  0x47   :  { %153 = dma.vmem_to_hbm [thread:$0]  %s151_s16, 16, %s432_s2, [#allocation4]  }
  0x48   :  { %s271_s28 = scalar_lea.vmem %s386_s14, 16  ;;  %s275_s29 = scalar_lea.vmem %s386_s14, 32 }
  0x49   :  { %p272_p10 = scmp.ne.s32.totalorder %s386_s14, %s271_s28  ;;  %p276_p11 = scmp.lt.s32.totalorder %s386_s14, %s386_s14 }
  0x4a   :  { %p277_p12 = scmp.lt.s32.totalorder %s275_s29, %s271_s28 }
  0x4c   :  { %p278_p13 = por %p277_p12, %p276_p11 }
  0x4e   :  { %p279_p0 = pnand %p278_p13, %p272_p10 }
  0x50   :  { %282 = shalt.err (!%p279_p0)
}
  0x51   :  { %s283_s6 = scalar_lea.hbm %s433_s3, 16 }
  0x52   :  { %p284_p1 = scmp.ne.s32.totalorder %s433_s3, %s283_s6  ;;  %p287_p2 = scmp.lt.u32.totalorder %s283_s6, %s433_s3 }
  0x54   :  { %p289_p3 = pnand %p287_p2, %p284_p1 }
  0x56   :  { %292 = shalt.err (!%p289_p3)
}
  0x57   :  { %163 = dma.vmem_to_hbm [thread:$0]  %s386_s14, 16, %s433_s3, [#allocation9]   ;;  %vm123_vm2 = vcmask 0  }
  0x58   :  { %s330_s3 = smov [#allocation10]  }
  0x59   :  { %s170_s12 = sshll.u32 %s330_s3, 4  ;;  %s171_s12 = int_to_ptr.vmem [resolvable:$true] %s170_s12 }
  0x5a   :  { %s293_s0 = scalar_lea.vmem %s171_s12, 16  ;;  %s297_s13 = scalar_lea.vmem %s171_s12, 32 }
  0x5b   :  { %p294_p4 = scmp.ne.s32.totalorder %s171_s12, %s293_s0  ;;  %p298_p5 = scmp.lt.s32.totalorder %s171_s12, %s171_s12 }
  0x5c   :  { %p299_p6 = scmp.lt.s32.totalorder %s297_s13, %s293_s0 }
  0x5e   :  { %p300_p7 = por %p299_p6, %p298_p5 }
  0x60   :  { %p301_p8 = pnand %p300_p7, %p294_p4 }
  0xb9   :  { %v102_v31 = vpop.xlane.xlu0 %101 }
  0xba   :  { %v108_v32 = vmax.f32 %v102_v31, 1.0  ;;  %vm106_vm0 = vcmp.gt.f32.partialorder %v102_v31, 0.0 }
  0xbb   :  { %v96_v35 = vpop.xlane.xlu1 %95 }
  0xbc   :  { %201 = vrcp.f32 %v108_v32 }
  0xbd   :  { %v105_v33 = vpop.xlane.xlu0 %104 }
  0xbe   :  { %v109_v34 = vmax.f32 %v105_v33, 1.0  ;;  %vm107_vm1 = vcmp.gt.f32.partialorder %v105_v33, 0.0 }
  0xbf   :  { %v99_v37 = vpop.xlane.xlu1 %98 }
  0xc0   :  { %203 = vrcp.f32 %v109_v34 }
  0xc6   :  { %v202_v36 = vpop.eup %201 }
  0xc7   :  { %v111_v38 = vmul.f32 %v202_v36, %v96_v35 }
  0xc9   :  { %v114_v41 = vsel %vm106_vm0, %v111_v38, 0.0 }
  0xca   :  { %v204_v39 = vpop.eup %203 }
  0xcb   :  { %v113_v40 = vmul.f32 %v204_v39, %v99_v37 }
  0xcd   :  { %v115_v42 = vsel %vm107_vm1, %v113_v40, 0.0 }
  0xce   :  { %v116_v43 = vadd.f32 %v115_v42, %v114_v41 }
  0xd0   :  { %v117_v44 = vrot.slane %v116_v43, 4 }
  0xd2   :  { %v118_v45 = vadd.f32 %v117_v44, %v116_v43 }
  0xd4   :  { %v119_v46 = vrot.slane %v118_v45, 2 }
  0xd6   :  { %v120_v47 = vadd.f32 %v119_v46, %v118_v45 }
  0xd8   :  { %v121_v48 = vrot.slane %v120_v47, 1 }
  0xda   :  { %v122_v49 = vadd.f32 %v121_v48, %v120_v47 }
  0xdc   :  { %124 = vst.msk [vmem:[#allocation10] sm:$0x1] %vm123_vm2, %v122_v49 }
  0xdd   :  { %304 = shalt.err (!%p301_p8)
}
  0xde   :  { %s305_s15 = scalar_lea.hbm %s434_s4, 16 }
  0xdf   :  { %p306_p9 = scmp.ne.s32.totalorder %s434_s4, %s305_s15  ;;  %p309_p10 = scmp.lt.u32.totalorder %s305_s15, %s434_s4 }
  0xe1   :  { %p311_p11 = pnand %p309_p10, %p306_p9 }
  0xe3   :  { %314 = shalt.err (!%p311_p11)
}
  0xe4   :  { %173 = dma.vmem_to_hbm [thread:$0]  %s171_s12, 16, %s434_s4, [#allocation9]  }
  0xe5   :  { %319 = dma.done.wait [#allocation4], 16  }
  0xe6   :  { %320 = vsyncadd [#allocation4], 4294967280 }
  0xe7   :  { %321 = dma.done.wait [#allocation9], 32  }
  0xe8   :  { %322 = vsyncadd [#allocation9], 4294967264 }
  0xe9   :  { %183 = vsyncpa [#allocation3], 1 }
  0xea   :  { %184 = vsyncpa [#allocation6], 1 }
  0xeb   :  { %185 = vsyncpa [#allocation4], 1 }
  0xec   :  { %186 = vsyncpa [#allocation9], 1 }

</bundles_post_ra>
